<compile_context>
chip_gen: v5e
topology: v5e:2x2
jax: 0.10.0
libtpu: 0.0.40
codegen_flags: <defaults>
</compile_context>

<pallas_src>
import math
from functools import partial

import jax
import jax.numpy as jnp
from jax.experimental import pallas as pl
from jax.experimental.pallas import tpu as pltpu


def _sigmoid_eup(x):
    # 0.5 * (tanh(x/2) + 1): keeps the sigmoid on the EUP (no VPU divide).
    return 0.5 * (jnp.tanh(0.5 * x) + 1.0)


# ---------------------------------------------------------------------------
# Kernel 1: hoisted attention projection  proj[b, l] = Wa^T @ attn[b, l]
# (no dependence on the recurrent state, fully parallel grid).
# ---------------------------------------------------------------------------
def _wa_proj_kernel(fs_ref, wat_ref, out_ref):
    out_ref[0, 0] = jnp.dot(wat_ref[...], fs_ref[0, 0],
                            preferred_element_type=jnp.float32)


# ---------------------------------------------------------------------------
# Kernel 2: recurrent attention + stacked LSTM + classifier head.
# grid=(B,); time loop runs inside the body, h/c carried as loop values.
# ---------------------------------------------------------------------------
def _attn_recurrent_kernel(proj_ref, fs_ref, ms_ref, h0h_ref, h0c_ref,
                           wht_ref, vt_ref, wih_ref, whh_ref, bias_ref,
                           wl_ref, bl_ref,
                           beta_ref, logit_ref, prob_ref, hx_ref, cx_ref,
                           *, n_layers, hidden_size, seq_len, prior_gamma):
    H = hidden_size
    dot = partial(jnp.dot, preferred_element_type=jnp.float32)

    # initial per-layer state, (H, 1) column vectors
    h0 = tuple(h0h_ref[0, i] for i in range(n_layers))
    c0 = tuple(h0c_ref[0, i] for i in range(n_layers))

    def step(l, carry):
        hs, cs = carry
        proj_l = proj_ref[0, l]        # (H, N)  hoisted  Wa^T @ attn
        attn_l = fs_ref[0, l]          # (A, N)  raw features, N lane-dense
        prior_l = ms_ref[0, l]         # (1, N)  prior map (assumed > 0)

        # attention scores: v^T tanh(Wa^T attn + Wh^T h_prev)   -> (1, N)
        hw = dot(wht_ref[...], hs[n_layers - 1])                # (H, 1)
        scores = dot(vt_ref[...], jnp.tanh(proj_l + hw))        # (1, N)

        # softmax over the spatial (lane) axis, times prior_map ** gamma
        m = jnp.max(scores, axis=-1, keepdims=True)
        e = jnp.exp(scores - m)
        w = e * pl.reciprocal(jnp.sum(e, axis=-1, keepdims=True), approx=True)
        w = w * jnp.exp(prior_gamma * jnp.log(prior_l))         # prior ** gamma
        beta_ref[0, l] = w                                      # lane-dense store

        # weighted context vector (column), renormalised
        denom = jnp.maximum(jnp.sum(w, axis=-1, keepdims=True), 1e-5)  # (1, 1)
        s = jnp.sum(attn_l * w, axis=-1, keepdims=True)         # (A, 1) VPU GEMV
        s = s * pl.reciprocal(denom, approx=True)

        # stacked LSTM cells (shared weights for every layer, as in PyTorch)
        x = s
        new_h, new_c = [], []
        for i in range(n_layers):
            gates = (dot(wih_ref[...], x) + dot(whh_ref[...], hs[i])
                     + bias_ref[...])                           # (4H, 1)
            i_g = _sigmoid_eup(gates[0:H])
            f_g = _sigmoid_eup(gates[H:2 * H])
            g_g = jnp.tanh(gates[2 * H:3 * H])
            o_g = _sigmoid_eup(gates[3 * H:4 * H])
            c_new = f_g * cs[i] + i_g * g_g
            h_new = o_g * jnp.tanh(c_new)
            new_h.append(h_new)
            new_c.append(c_new)
            x = h_new

        # classifier head: Linear + softmax over the vocabulary axis
        logits = dot(wl_ref[...], x) + bl_ref[...]              # (V, 1)
        ml = jnp.max(logits, axis=0, keepdims=True)
        el = jnp.exp(logits - ml)
        probs = el * pl.reciprocal(jnp.sum(el, axis=0, keepdims=True),
                                   approx=True)
        logit_ref[0, l] = logits
        prob_ref[0, l] = probs

        return tuple(new_h), tuple(new_c)

    hs, cs = jax.lax.fori_loop(0, seq_len, step, (h0, c0))

    # final hidden / cell state: written once, after the whole sequence
    for i in range(n_layers):
        hx_ref[0, i] = hs[i]
        cx_ref[0, i] = cs[i]


def attn_encoder_forward(Fs, h0, Ms, params, *, prior_gamma, n_layers):
    """Fs: (B, L, F, h, w), h0: tuple of (B, n_layers, H), Ms: (B, L, h, w)."""
    B, L, A, hh, ww = Fs.shape
    N = hh * ww
    H = params['Wh'].shape[0]
    V = params['Wl'].shape[0]

    # natural, lane-dense layouts (spatial axis N on lanes): no HBM transposes.
    Fs_nat = Fs.reshape(B, L, A, N).astype(jnp.float32)     # (B, L, A, N)
    Ms_nat = Ms.reshape(B, L, 1, N).astype(jnp.float32)     # (B, L, 1, N)
    h0_h = h0[0][:, :, :, None]                             # (B, n_layers, H, 1)
    h0_c = h0[1][:, :, :, None]

    wa_T = params['Wa'].T                                   # (H, A)
    wh_T = params['Wh'].T                                   # (H, H)
    v_T = params['v'].T                                     # (1, H)
    w_ih = params['W_ih']                                   # (4H, A)
    w_hh = params['W_hh']                                   # (4H, H)
    bias = (params['b_ih'] + params['b_hh'])[:, None]       # (4H, 1)
    wl = params['Wl']                                       # (V, H)
    bl = params['bl'][:, None]                              # (V, 1)

    # --- hoisted projection: fully parallel, one GEMM per (b, l) tile -------
    proj = pl.pallas_call(
        _wa_proj_kernel,
        out_shape=jax.ShapeDtypeStruct((B, L, H, N), jnp.float32),
        grid_spec=pltpu.PrefetchScalarGridSpec(
            num_scalar_prefetch=0,
            grid=(B, L),
            in_specs=[pl.BlockSpec((1, 1, A, N), lambda b, l: (b, l, 0, 0)),
                      pl.BlockSpec((H, A), lambda b, l: (0, 0))],
            out_specs=pl.BlockSpec((1, 1, H, N), lambda b, l: (b, l, 0, 0))),
        compiler_params=pltpu.CompilerParams(
            dimension_semantics=("parallel", "parallel")),
    )(Fs_nat, wa_T)

    # --- recurrent kernel: grid over batch only, time loop inside ----------
    kernel = partial(_attn_recurrent_kernel, n_layers=n_layers,
                     hidden_size=H, seq_len=L, prior_gamma=prior_gamma)

    out_shape = (
        jax.ShapeDtypeStruct((B, L, 1, N), jnp.float32),          # betas
        jax.ShapeDtypeStruct((B, L, V, 1), jnp.float32),          # logits
        jax.ShapeDtypeStruct((B, L, V, 1), jnp.float32),          # probs
        jax.ShapeDtypeStruct((B, n_layers, H, 1), jnp.float32),   # hx
        jax.ShapeDtypeStruct((B, n_layers, H, 1), jnp.float32),   # cx
    )

    grid_spec = pltpu.PrefetchScalarGridSpec(
        num_scalar_prefetch=0,
        grid=(B,),
        in_specs=[
            pl.BlockSpec((1, L, H, N), lambda b: (b, 0, 0, 0)),         # proj
            pl.BlockSpec((1, L, A, N), lambda b: (b, 0, 0, 0)),         # Fs
            pl.BlockSpec((1, L, 1, N), lambda b: (b, 0, 0, 0)),         # Ms
            pl.BlockSpec((1, n_layers, H, 1), lambda b: (b, 0, 0, 0)),  # h0 h
            pl.BlockSpec((1, n_layers, H, 1), lambda b: (b, 0, 0, 0)),  # h0 c
            pl.BlockSpec((H, H), lambda b: (0, 0)),                     # Wh^T
            pl.BlockSpec((1, H), lambda b: (0, 0)),                     # v^T
            pl.BlockSpec((4 * H, A), lambda b: (0, 0)),                 # W_ih
            pl.BlockSpec((4 * H, H), lambda b: (0, 0)),                 # W_hh
            pl.BlockSpec((4 * H, 1), lambda b: (0, 0)),                 # bias
            pl.BlockSpec((V, H), lambda b: (0, 0)),                     # Wl
            pl.BlockSpec((V, 1), lambda b: (0, 0)),                     # bl
        ],
        out_specs=(
            pl.BlockSpec((1, L, 1, N), lambda b: (b, 0, 0, 0)),
            pl.BlockSpec((1, L, V, 1), lambda b: (b, 0, 0, 0)),
            pl.BlockSpec((1, L, V, 1), lambda b: (b, 0, 0, 0)),
            pl.BlockSpec((1, n_layers, H, 1), lambda b: (b, 0, 0, 0)),
            pl.BlockSpec((1, n_layers, H, 1), lambda b: (b, 0, 0, 0)),
        ),
    )

    betas, logits, probs, hx, cx = pl.pallas_call(
        kernel,
        out_shape=out_shape,
        grid_spec=grid_spec,
        compiler_params=pltpu.CompilerParams(
            dimension_semantics=("parallel",)),   # v7x: batches over both TCs
    )(proj, Fs_nat, Ms_nat, h0_h, h0_c,
      wh_T, v_T, w_ih, w_hh, bias, wl, bl)

    logits = logits[:, :, :, 0]                        # (B, L, V)
    probs = probs[:, :, :, 0]                          # (B, L, V)
    betas = betas.reshape(B, L, hh, ww)                # (B, L, h, w)
    hx = jnp.transpose(hx[:, :, :, 0], (1, 0, 2))      # (n_layers, B, H)
    cx = jnp.transpose(cx[:, :, :, 0], (1, 0, 2))
    return logits, probs, (hx, cx), betas


def attn_encoder_reference(Fs, h0, Ms, params, *, prior_gamma, n_layers):
    """Pure-JAX transcription of the PyTorch forward (for verification)."""
    B, L, A, hh, ww = Fs.shape
    N = hh * ww
    H = params['Wh'].shape[0]
    hx = jnp.transpose(h0[0], (1, 0, 2))
    cx = jnp.transpose(h0[1], (1, 0, 2))
    Fs_f = Fs.reshape(B, L, A, N).transpose(1, 0, 3, 2)   # (L, B, N, A)
    Ms_f = Ms.reshape(B, L, N).transpose(1, 0, 2)         # (L, B, N)
    ys, betas = [], []
    for t in range(L):
        attn = jnp.transpose(Fs_f[t], (1, 0, 2))          # (N, B, A)
        prior = jnp.transpose(Ms_f[t], (1, 0))            # (N, B)
        prev = hx[-1]
        aw = (attn.reshape(-1, A) @ params['Wa']).reshape(N, B, H) + prev @ params['Wh']
        scores = (jnp.tanh(aw).reshape(-1, H) @ params['v']).reshape(N, B)
        w = jax.nn.softmax(scores, axis=0)
        w = w * prior ** prior_gamma
        s = (w[:, :, None] * attn).sum(0) / jnp.maximum(w.sum(0), 1e-5)[:, None]
        x = s
        nh, nc = [], []
        for i in range(n_layers):
            gates = (x @ params['W_ih'].T + params['b_ih']
                     + hx[i] @ params['W_hh'].T + params['b_hh'])
            i_g, f_g, g_g, o_g = jnp.split(gates, 4, axis=-1)
            c = jax.nn.sigmoid(f_g) * cx[i] + jax.nn.sigmoid(i_g) * jnp.tanh(g_g)
            h = jax.nn.sigmoid(o_g) * jnp.tanh(c)
            nh.append(h); nc.append(c); x = h
        hx = jnp.stack(nh, 0); cx = jnp.stack(nc, 0)
        ys.append(x); betas.append(w)
    ys = jnp.stack(ys, 0)
    betas = jnp.stack(betas, 0)
    logits = ys @ params['Wl'].T + params['bl']
    probs = jax.nn.softmax(logits, axis=-1)
    betas = jnp.transpose(betas, (2, 0, 1)).reshape(B, L, hh, ww)
    return (jnp.transpose(logits, (1, 0, 2)),
            jnp.transpose(probs, (1, 0, 2)),
            (hx, cx), betas)


if __name__ == "__main__":
    B, L = 2, 3
    hh = ww = 8
    H = A = 32          # attn_size == hidden_size (needed for n_layers > 1)
    V = 5
    n_layers = 2
    gamma = 1.5

    key = jax.random.PRNGKey(0)
    ks = jax.random.split(key, 16)

    def uni(k, shape, s):
        return jax.random.uniform(k, shape, jnp.float32, minval=-s, maxval=s)

    bound = 1.0 / math.sqrt(H)
    params = {
        'Wa':   uni(ks[0], (A, H), 0.3),
        'Wh':   uni(ks[1], (H, H), 0.3),
        'v':    uni(ks[2], (H, 1), math.sqrt(6.0 / (H + 1))),
        'W_ih': uni(ks[3], (4 * H, A), bound),
        'W_hh': uni(ks[4], (4 * H, H), bound),
        'b_ih': uni(ks[5], (4 * H,), bound),
        'b_hh': uni(ks[6], (4 * H,), bound),
        'Wl':   uni(ks[7], (V, H), bound),
        'bl':   uni(ks[8], (V,), bound),
    }

    Fs = jax.random.normal(ks[9], (B, L, A, hh, ww), jnp.float32)
    Ms = jax.random.uniform(ks[10], (B, L, hh, ww), jnp.float32,
                            minval=0.05, maxval=1.0)
    h0 = (0.1 * jax.random.normal(ks[11], (B, n_layers, H), jnp.float32),
          0.1 * jax.random.normal(ks[12], (B, n_layers, H), jnp.float32))

    logits, probs, (hx, cx), betas = attn_encoder_forward(
        Fs, h0, Ms, params, prior_gamma=gamma, n_layers=n_layers)
    jax.block_until_ready((logits, probs, hx, cx, betas))

    rl, rp, (rhx, rcx), rb = attn_encoder_reference(
        Fs, h0, Ms, params, prior_gamma=gamma, n_layers=n_layers)

    # Tolerance accounts for default-precision (single bf16 MXU pass) matmuls
    # and pl.reciprocal(approx=True), per the performance review.
    for got, want in [(logits, rl), (probs, rp), (hx, rhx), (cx, rcx), (betas, rb)]:
        assert got.shape == want.shape, (got.shape, want.shape)
        assert jnp.allclose(got, want, atol=1e-2, rtol=1e-2), \
            float(jnp.max(jnp.abs(got - want)))

    print("KERNEL_OK")
</pallas_src>

<mosaic_0001>
module attributes {stable_mosaic.version = 11 : i64} {
  func.func @_wa_proj_kernel(%arg0: i32, %arg1: i32, %arg2: memref<1x1x32x64xf32, #tpu.memory_space<vmem>>, %arg3: memref<32x32xf32, #tpu.memory_space<vmem>>, %arg4: memref<1x1x32x64xf32, #tpu.memory_space<vmem>>) attributes {dimension_semantics = [#tpu.dimension_semantics<parallel>, #tpu.dimension_semantics<parallel>], iteration_bounds = array<i64: 2, 3>, scalar_prefetch = 0 : i64, scratch_operands = 0 : i64, tpu.core_type = #tpu.core_type<tc>, window_params = [{transform_indices = @transform_0, window_bounds = array<i64: 1, 1, 32, 64>}, {pipeline_mode = #tpu.pipeline_mode<synchronous>, transform_indices = @transform_1, window_bounds = array<i64: 32, 32>}, {transform_indices = @transform_2, window_bounds = array<i64: 1, 1, 32, 64>}]} {
    %c0 = arith.constant 0 : index
    %c0_0 = arith.constant 0 : index
    %0 = vector.load %arg3[%c0, %c0_0] : memref<32x32xf32, #tpu.memory_space<vmem>>, vector<32x32xf32>
    %c0_1 = arith.constant 0 : index
    %c0_2 = arith.constant 0 : index
    %c0_3 = arith.constant 0 : index
    %c0_4 = arith.constant 0 : index
    %1 = vector.load %arg2[%c0_1, %c0_2, %c0_3, %c0_4] : memref<1x1x32x64xf32, #tpu.memory_space<vmem>>, vector<1x1x32x64xf32>
    %2 = vector.shape_cast %1 : vector<1x1x32x64xf32> to vector<32x64xf32>
    %cst = arith.constant dense<0.000000e+00> : vector<32x64xf32>
    %3 = tpu.matmul %0, %2, %cst {dimension_numbers = #tpu.dot_dimension_numbers<[1], [0], [0], [1], [0, 0, 1, 1], [], []>} : vector<32x32xf32>, vector<32x64xf32>, vector<32x64xf32> -> vector<32x64xf32>
    %c0_5 = arith.constant 0 : index
    %c0_6 = arith.constant 0 : index
    %c0_7 = arith.constant 0 : index
    %c0_8 = arith.constant 0 : index
    %4 = vector.load %arg4[%c0_5, %c0_6, %c0_7, %c0_8] : memref<1x1x32x64xf32, #tpu.memory_space<vmem>>, vector<1x1x32x64xf32>
    %5 = vector.shape_cast %4 : vector<1x1x32x64xf32> to vector<32x64xf32>
    %6 = vector.shape_cast %3 : vector<32x64xf32> to vector<1x1x32x64xf32>
    tpu.vector_store %arg4[%c0_5, %c0_6, %c0_7, %c0_8], %6 {strides = array<i32>} : memref<1x1x32x64xf32, #tpu.memory_space<vmem>>, vector<1x1x32x64xf32>,
    return
  }
  func.func @transform_0(%arg0: i32, %arg1: i32) -> (i32, i32, i32, i32) {
    %c0_i32 = arith.constant 0 : i32
    %c0_i32_0 = arith.constant 0 : i32
    %c0_i32_1 = arith.constant 0 : i32
    return %arg0, %arg1, %c0_i32, %c0_i32_0 : i32, i32, i32, i32
  }
  func.func @transform_1(%arg0: i32, %arg1: i32) -> (i32, i32) {
    %c0_i32 = arith.constant 0 : i32
    %c0_i32_0 = arith.constant 0 : i32
    %c0_i32_1 = arith.constant 0 : i32
    return %c0_i32, %c0_i32_0 : i32, i32
  }
  func.func @transform_2(%arg0: i32, %arg1: i32) -> (i32, i32, i32, i32) {
    %c0_i32 = arith.constant 0 : i32
    %c0_i32_0 = arith.constant 0 : i32
    %c0_i32_1 = arith.constant 0 : i32
    return %arg0, %arg1, %c0_i32, %c0_i32_0 : i32, i32, i32, i32
  }
}

</mosaic_0001>

<bundles_post_ra>
// kernel: tpu_custom_call.1
= control target key start
LH: loop header
LB: loop body
LE: loop exit
PB: predicated region body
PF: predicated region fallthrough
CT: control target
= control target key end

     0   :  { %s861_s0 = inlined_call_operand.hbm [shape: f32[2,3,32,64], index: 0, kind: input, shape index: {}]   ;;  %s862_s1 = inlined_call_operand.hbm [shape: f32[32,32], index: 1, kind: input, shape index: {}]   ;;  %s863_s2 = inlined_call_operand.hbm [shape: f32[2,3,32,64], index: 2, kind: output, shape index: {}]  }
   0x1   :  { %870 = sst [smem:[#allocation15_spill]] %s862_s1 }
   0x2   :  { %7 = vsyncpa [#allocation3], 0 }
   0x3   :  { %9 = vsyncpa [#allocation3 + $0x1], 0 }
   0x4   :  { %10 = vsyncpa [#allocation6], 0 }
   0x5   :  { %11 = vsyncpa [#allocation4], 0 }
   0x6   :  { %13 = vsyncpa [#allocation4 + $0x1], 0  ;;  %s684_s9 = smov 0   ;;  %s686_s10 = smov 0  }
   0x7   :  { %s688_s11 = smov 0   ;;  %s690_s12 = smov 0  }
   0x8   :  { %s692_s13 = smov 0   ;;  %s694_s14 = smov 0  }
   0x9   :  { %s696_s15 = smov 0   ;;  %s698_s16 = smov 0  }
   0xa LB: > { %871 = sst [smem:[#allocation11_spill]] %s634_s9  ;;  %s372_s17 = sadd.s32 4294967295, %s662_s16   ;;  %s662_s16 = sphi %s698_s16, %s19_s16   ;;  %s658_s15 = sphi %s696_s15, %s894_s15   ;;  %s654_s14 = sphi %s694_s14, %s893_s14   ;;  %s650_s13 = sphi %s692_s13, %s892_s13   ;;  %s646_s12 = sphi %s690_s12, %s891_s12   ;;  %s642_s11 = sphi %s688_s11, %s890_s11   ;;  %s638_s10 = sphi %s686_s10, %s889_s10   ;;  %s634_s9 = sphi %s684_s9, %s888_s9  }
   0xb   : > { %s373_s18 = sadd.s32 4294967294, %s662_s16   ;;  %p53_p0 = scmp.ne.s32.totalorder %s638_s10, %s634_s9 }
   0xc   : > { %p728_p1 = scmp.eq.s32.totalorder %s372_s17, 0  ;;  %p106_p2 = scmp.eq.s32.totalorder %s373_s18, 5 }
   0xd   : > { %p374_p4 = scmp.ge.s32.totalorder %s662_s16, 1  ;;  %p113_p6 = scmp.lt.s32.totalorder %s662_s16, 7 }
   0xe   : > { %p734_p3 = por %p728_p1, %p53_p0  ;;  %p739_p5 = por %p106_p2, %p53_p0 }
   0xf   : > { %s876_s1 = sld [smem:[#allocation15_spill]]  ;;  %p747_p7 = pnand %p374_p4, %p113_p6 }
  0x10   : > { %s874_s21 = scalar_select %p739_p5, 1, 0 }
  0x11   : > { %p415_p8 = pneg %p747_p7  ;;  %s664_s26 = smov [#allocation5]  }
  0x12   : > { %875 = sst [smem:[#allocation12_spill]] %s874_s21  ;;  %s126_s27 = sshll.u32 %s664_s26, 4  ;;  %s127_s27 = int_to_ptr.vmem [resolvable:$true] %s126_s27 }
  0x13   : > { %p416_p9 = pnand %p415_p8, %p728_p1  ;;  %s864_s28 = smov 128  }
  0x14   : > { %s865_s29 = smov 8   ;;  %s28_s30 = sadd.s32 1, %s654_s14 }
  0x15   : > { %s124_s24 = sshll.u32 %s876_s1, 4  ;;  %p29_p10 = scmp.ge.s32.totalorder %s28_s30, 3  ;;  %s125_s24 = int_to_ptr.hbm [resolvable:$true] %s124_s24 }
  0x16   : > { %418 = dma.hbm_to_vmem [thread:$0]  (!%p416_p9), %s125_s24, 512, %s127_s27, [#allocation6], %s864_s28, %s864_s28, %s865_s29  }
  0x17   : > { %s31_s3 = sadd.s32 1, %s658_s15  ;;  %p100_p11 = scmp.eq.s32.totalorder %s372_s17, 5 }
  0x18   : > { %p47_p12 = scmp.ne.s32.totalorder %s642_s11, %s638_s10  ;;  %s896_s30 = smov (%p29_p10, %s28_s30), 0 }
  0x19   : > { %878 = sst [smem:[#allocation13_spill]] %s896_s30  ;;  %s898_s3 = smov (!%p29_p10, %s31_s3), %s658_s15 }
  0x1a   : > { %s40_s4 = sadd.s32 1, %s642_s11  ;;  %p48_p13 = scmp.eq.s32.totalorder %s662_s16, 0 }
  0x1b   : > { %p33_p0 = scmp.ge.s32.totalorder %s898_s3, 2  ;;  %p767_p2 = por %p100_p11, %p47_p12 }
  0x1c   : > { %s36_s6 = ssub.s32 %s654_s14, %s896_s30  ;;  %p773_p4 = por %p48_p13, %p47_p12 }
  0x1d   : > { %s900_s3 = smov (%p33_p0, %s898_s3), 0  ;;  %p428_p6 = scmp.lt.s32.totalorder %s662_s16, 6 }
  0x1e   : > { %881 = sst [smem:[#allocation14_spill]] %s900_s3  ;;  %s140_s8 = sand.u32 1, %s642_s11  }
  0x1f   : > { %s35_s17 = ssub.s32 %s658_s15, %s900_s3  ;;  %s378_s18 = sshll.u32 %s654_s14, 2 }
  0x20   : > { %s37_s22 = sor.u32 %s36_s6, %s35_s17  ;;  %s377_s23 = sshll.u32 %s140_s8, 5 }
  0x21   : > { %p38_p8 = scmp.eq.s32.totalorder %s37_s22, 0  ;;  %s405_s24 = smul.u32 12, %s658_s15 }
  0x22   : > { %s144_s26 = scalar_lea.vmem [#allocation2], %s377_s23  ;;  %p420_p9 = pnand %p428_p6, %p773_p4 }
  0x23   : > { %s154_s27 = sshll.u32 %s144_s26, 4  ;;  %s149_s29 = sadd.s32 %s405_s24, %s378_s18  ;;  %s155_s27 = int_to_ptr.vmem [resolvable:$true] %s154_s27 }
  0x24   : > { %s786_s28 = scalar_select %p38_p8, %s642_s11, %s40_s4  }
  0x25   : > { %s379_s1 = sshll.u32 %s149_s29, 3  ;;  %s141_s6 = scalar_lea.sflag [#allocation3], %s140_s8 }
  0x26   : > { %s151_s9 = scalar_lea.hbm %s861_s0, %s379_s1  ;;  %s882_s17 = smov 8  }
  0x27   : > { %s152_s3 = sshll.u32 %s151_s9, 4  ;;  %s883_s22 = smov 128   ;;  %s153_s3 = int_to_ptr.hbm [resolvable:$true] %s152_s3 }
  0x28   : > { %422 = dma.hbm_to_vmem [thread:$0]  (!%p420_p9), %s153_s3, 512, %s155_s27, %s141_s6, %s883_s22, %s883_s22, %s882_s17  }
  0x29   : > { %166 = sbr.rel (%p747_p7) target bundleno = 194 (0xc2), region = 28  ;;  %s801_s29 = sand.u32 (!%p747_p7), 1, %s638_s10  }
  0x2a   : > { %s381_s21 = sshll.u32 (!%p747_p7), %s801_s29, 5  ;;  %s169_s1 = scalar_lea.sflag (!%p747_p7), [#allocation3], %s801_s29 }
  0x2b   : > { %s172_s9 = scalar_lea.vmem (!%p747_p7), [#allocation2], %s381_s21 }
  0x2e   : > { %621 = dma.done.wait (%p734_p3), %s169_s1, 512  }
  0x2f   : > { %623 = vsyncadd (%p734_p3), %s169_s1, 4294966784 }
  0x30   : > { %625 = dma.done.wait (%p728_p1), [#allocation6], 512  }
  0x31   : > { %627 = vsyncadd (%p728_p1), [#allocation6], 4294966784  ;;  %v206_v0 = vld [vmem:[%s172_s9 + $0x18] sm:$0xff]  ;;  %v205_v1 = vld [vmem:[%s172_s9 + $0x10] sm:$0xff]  ;;  %vm207_vm0 = vcmask 261120   ;;  %s406_s19 = smul.u32 12, %s650_s13 }
  0x32   : > { %394 = vmatpush.msra.mxu2 %v206_v0  ;;  %395 = vmatpush.msra.mxu3 %v206_v0  ;;  %v204_v2 = vld [vmem:[%s172_s9 + $0x8] sm:$0xff]  ;;  %v203_v3 = vld [vmem:[%s172_s9] sm:$0xff]  ;;  %v201_v4 = vld [vmem:[#allocation5 + $0x10] sm:$0xff]  ;;  %s389_s20 = sshll.u32 %s646_s12, 2  ;;  %vm249_vm1 = vcmask 523264   ;;  %s198_s8 = scalar_lea.vmem [#allocation7], %s381_s21 }
  0x33   : > { %232 = vmatpush.msra.mxu0 %v206_v0  ;;  %393 = vmatpush.msra.mxu1 %v206_v0  ;;  %v202_v5 = vld [vmem:[#allocation5 + $0x18] sm:$0xff]  ;;  %v199_v6 = vld [vmem:[#allocation5] sm:$0xff]  ;;  %v200_v7 = vld [vmem:[#allocation5 + $0x8] sm:$0xff]  ;;  %s266_s25 = sadd.s32 %s406_s19, %s389_s20  ;;  %s269_s18 = sshll.u32 %s198_s8, 4  ;;  %s270_s18 = int_to_ptr.vmem [resolvable:$true] %s269_s18 }
  0x34   : > { %397 = vmatpush.msra.mxu2 %v205_v1  ;;  %398 = vmatpush.msra.mxu3 %v205_v1  ;;  %s390_s30 = sshll.u32 %s266_s25, 3  ;;  %s255_s12 = scalar_lea.sflag [#allocation4], %s801_s29 }
  0x35   : > { %233 = vmatpush.msra.mxu0 %v205_v1  ;;  %396 = vmatpush.msra.mxu1 %v205_v1  ;;  %s268_s7 = scalar_lea.hbm %s863_s2, %s390_s30  ;;  %s580_s6 = scalar_lea.hbm %s863_s2, 192 }
  0x36   : > { %400 = vmatpush.msra.mxu2 %v204_v2  ;;  %401 = vmatpush.msra.mxu3 %v204_v2  ;;  %s271_s23 = sshll.u32 %s268_s7, 4  ;;  %s272_s23 = int_to_ptr.hbm [resolvable:$true] %s271_s23 }
  0x37   : > { %234 = vmatpush.msra.mxu0 %v204_v2  ;;  %399 = vmatpush.msra.mxu1 %v204_v2  ;;  %s574_s13 = sshra.s32 %s272_s23, 4  ;;  %s575_s13 = int_to_ptr.hbm [resolvable:$true] %s574_s13 }
  0x38   : > { %403 = vmatpush.msra.mxu2 %v203_v3  ;;  %404 = vmatpush.msra.mxu3 %v203_v3  ;;  %s576_s24 = scalar_lea.hbm %s575_s13, 32  ;;  %p581_p10 = scmp.lt.s32.totalorder %s575_s13, %s863_s2 }
  0x39   : > { %386 = vmatmul.msk.f32.vlgmr.msra.gmra.mxu2 %vm207_vm0, %v201_v4  ;;  %387 = vmatmul.msk.f32.vlgmr.msra.gmra.mxu3 %vm207_vm0, %v202_v5  ;;  %p577_p1 = scmp.ne.s32.totalorder %s575_s13, %s576_s24  ;;  %p582_p11 = scmp.lt.s32.totalorder %s580_s6, %s576_s24 }
  0x3a   : > { %235 = vmatpush.msra.mxu0 %v203_v3  ;;  %402 = vmatpush.msra.mxu1 %v203_v3 }
  0x3b   : > { %384 = vmatmul.msk.f32.vlgmr.msra.gmra.mxu0 %vm207_vm0, %v199_v6  ;;  %385 = vmatmul.msk.f32.vlgmr.msra.gmra.mxu1 %vm207_vm0, %v200_v7  ;;  %p578_p3 = pnand %p577_p1, %p767_p2  ;;  %p583_p12 = por %p582_p11, %p581_p10 }
  0x3d   : > { %p579_p7 = pneg %p578_p3 }
  0x3f   : > { %p584_p13 = pnand %p583_p12, %p579_p7 }
  0xb8   : > { %v237_v8 = vpop.f32.mrf.mxu0  ;;  %v240_v9 = vpop.f32.mrf.mxu1 }
  0xb9   : > { %250 = vst.msk [vmem:[%s198_s8] sm:$0xff] %vm249_vm1, %v237_v8 }
  0xba   : > { %251 = vst.msk [vmem:[%s198_s8 + $0x8] sm:$0xff] %vm249_vm1, %v240_v9 }
  0xbc   : > { %v243_v10 = vpop.f32.mrf.mxu2  ;;  %v246_v11 = vpop.f32.mrf.mxu3 }
  0xbd   : > { %252 = vst.msk [vmem:[%s198_s8 + $0x10] sm:$0xff] %vm249_vm1, %v243_v10 }
  0xbe   : > { %253 = vst.msk [vmem:[%s198_s8 + $0x18] sm:$0xff] %vm249_vm1, %v246_v11 }
  0xbf   : > { %587 = shalt.err (!%p584_p13)
}
  0xc0   : > { %s667_s29 = smov 128   ;;  %s668_s21 = smov 8  }
  0xc1   : > { %413 = dma.vmem_to_hbm [thread:$0]  (%p767_p2), %s270_s18, 512, %s272_s23, %s255_s12, %s667_s29, %s667_s29, %s668_s21  }
  0xc2 PF: > { %s884_s1 = sld [smem:[#allocation11_spill]]  ;;  %p430_p0 = scmp.ge.s32.totalorder %s662_s16, 2 }
  0xc4   : > { %p424_p4 = pnand %p430_p0, %p739_p5 }
  0xc6   : > { %p425_p6 = pneg %p424_p4 }
  0xc8   : > { %s286_s19 = sand.u32 1, %s884_s1  }
  0xc9   : > { %s287_s20 = scalar_lea.sflag [#allocation4], %s286_s19 }
  0xca   : > { %629 = dma.done.wait (%p425_p6), %s287_s20, 512  }
  0xcb   : > { %631 = vsyncadd (%p425_p6), %s287_s20, 4294966784  ;;  %s19_s16 = sadd.s32 1, %s662_s16   ;;  %s886_s5 = sld [smem:[#allocation13_spill]] }
  0xcc   : > { %p16_p8 = scmp.ge.s32.totalorder %s19_s16, 8   ;;  %s887_s25 = sld [smem:[#allocation14_spill]] }
  0xcd   : > { %s888_s9 = smov %s638_s10  ;;  %s889_s10 = smov %s642_s11 }
  0xce   : > { %s890_s11 = smov %s786_s28  ;;  %s891_s12 = smov %s654_s14 }
  0xcf   : > { %s892_s13 = smov %s658_s15  ;;  %18 = sbr.rel (!%p16_p8) target bundleno = 10 (0xa), region = 77 }
  0xd1   : > { %s893_s14 = smov %s886_s5 }
  0xd2   : > { %s894_s15 = smov %s887_s25 }
  0xd4   :  { %293 = vsyncpa [#allocation3], 1 }
  0xd5   :  { %295 = vsyncpa [#allocation3 + $0x1], 1 }
  0xd6   :  { %296 = vsyncpa [#allocation6], 1 }
  0xd7   :  { %297 = vsyncpa [#allocation4], 1 }
  0xd8   :  { %299 = vsyncpa [#allocation4 + $0x1], 1 }

</bundles_post_ra>
